<compile_context>
chip_gen: v6e
topology: v6e:2x2x1
jax: 0.10.0
libtpu: 0.0.40
codegen_flags: <defaults>
</compile_context>

<pallas_src>
import jax
import jax.numpy as jnp
from jax.experimental import pallas as pl
from jax.experimental.pallas import tpu as pltpu

SUBLANE = 8  # f32/row alignment for the second-to-last (batch) block dim


def _round_up(x, m):
    return ((x + m - 1) // m) * m


def _cdiv(a, b):
    return (a + b - 1) // b


def actor_kernel(s_ref, w1_ref, b1_ref, w2_ref, b2_ref, w3_ref, b3_ref,
                 max_a_ref, out_ref):
    # Layer 1: relu(s @ W1 + b1)   (bf16 MXU operands, f32 accumulate)
    h1 = jnp.dot(s_ref[...], w1_ref[...], preferred_element_type=jnp.float32)
    h1 = jnp.maximum(h1 + b1_ref[...], 0.0)
    # Layer 2: relu(h1 @ W2 + b2)
    h2 = jnp.dot(h1.astype(jnp.bfloat16), w2_ref[...],
                 preferred_element_type=jnp.float32)
    h2 = jnp.maximum(h2 + b2_ref[...], 0.0)
    # Layer 3: max_action * sigmoid(h2 @ W3 + b3)
    logits = jnp.dot(h2.astype(jnp.bfloat16), w3_ref[...],
                     preferred_element_type=jnp.float32)
    logits = logits + b3_ref[...]
    # sigmoid = 1 / (1 + exp(-x)); exp + approx reciprocal both live on the EUP
    # slot, keeping the VPU free (micro-opt; kernel is DMA-bound anyway).
    e = jnp.exp(-logits)
    sig = pl.reciprocal(1.0 + e, approx=True)
    out_ref[...] = (max_a_ref[0, 0] * sig).astype(out_ref.dtype)


def prepare_actor_params(params):
    """One-time (hoisted out of the hot path) weight/bias prep:
    weights -> bf16 MXU operands, biases -> (1, out) f32 rows."""
    w1, b1, w2, b2, w3, b3 = params
    bf16, f32 = jnp.bfloat16, jnp.float32
    return (
        jnp.asarray(w1, bf16), jnp.reshape(jnp.asarray(b1, f32), (1, -1)),
        jnp.asarray(w2, bf16), jnp.reshape(jnp.asarray(b2, f32), (1, -1)),
        jnp.asarray(w3, bf16), jnp.reshape(jnp.asarray(b3, f32), (1, -1)),
    )


def actor_forward(s, prepared_params, max_action, *, batch_tile=2048):
    """s: [B, state_dim] float32 -> a: [B, action_dim] float32.

    `prepared_params` must come from `prepare_actor_params` (bf16 weights,
    (1, out) f32 biases); weight prep is deliberately NOT done per call.
    """
    w1, b1, w2, b2, w3, b3 = prepared_params
    B, state_dim = s.shape
    action_dim = w3.shape[1]

    # Balanced batch tile: split B into cdiv(B, batch_tile) near-equal tiles,
    # each a multiple of 8 rows, so the last tile isn't mostly padding.
    num_tiles = max(1, _cdiv(B, batch_tile))
    TB = _round_up(_cdiv(B, num_tiles), SUBLANE)
    Bp = num_tiles * TB

    # Activation prep (the only per-call work): cast to bf16, pad batch rows
    # to the tile multiple if needed.  Feature dims stay natural (no lane pad).
    s_bf = s.astype(jnp.bfloat16)
    if Bp != B:
        s_bf = jnp.zeros((Bp, state_dim), jnp.bfloat16).at[:B].set(s_bf)

    max_a = jnp.full((1, 1), max_action, dtype=jnp.float32)

    # Weights/biases: same (full-array) block every grid step -> VMEM-resident.
    resident = lambda arr: pl.BlockSpec(arr.shape, lambda i: (0, 0))

    out = pl.pallas_call(
        actor_kernel,
        out_shape=jax.ShapeDtypeStruct((Bp, action_dim), jnp.float32),
        grid=(num_tiles,),
        in_specs=[
            # Activations: batch-tiled, natural (unpadded) feature dim.
            pl.BlockSpec((TB, state_dim), lambda i: (i, 0)),
            resident(w1), resident(b1),
            resident(w2), resident(b2),
            resident(w3), resident(b3),
            pl.BlockSpec(memory_space=pltpu.SMEM),      # max_action scalar
        ],
        # Compact output: natural action_dim lanes (no padded writeback).
        out_specs=pl.BlockSpec((TB, action_dim), lambda i: (i, 0)),
        compiler_params=pltpu.CompilerParams(
            dimension_semantics=("parallel",),  # shard batch over TCs (v7x)
        ),
    )(s_bf, w1, b1, w2, b2, w3, b3, max_a)

    return out[:B] if Bp != B else out


def init_actor_params(key, state_dim, hidden_width, action_dim):
    """Deterministic synthetic init (PyTorch nn.Linear-style uniform bounds)."""
    keys = jax.random.split(key, 6)

    def linear(kw, kb, fan_in, fan_out):
        bound = 1.0 / jnp.sqrt(jnp.float32(fan_in))
        w = jax.random.uniform(kw, (fan_in, fan_out), jnp.float32, -bound, bound)
        b = jax.random.uniform(kb, (1, fan_out), jnp.float32, -bound, bound)
        return w, b

    w1, b1 = linear(keys[0], keys[1], state_dim, hidden_width)
    w2, b2 = linear(keys[2], keys[3], hidden_width, hidden_width)
    w3, b3 = linear(keys[4], keys[5], hidden_width, action_dim)
    return (w1, b1, w2, b2, w3, b3)


def actor_reference_bf16(s, params, max_action):
    """Pure-JAX reference mimicking the kernel's bf16-operand / f32-accum dots."""
    w1, b1, w2, b2, w3, b3 = params
    bf16 = jnp.bfloat16
    h1 = jnp.maximum(
        jnp.dot(s.astype(bf16), w1.astype(bf16),
                preferred_element_type=jnp.float32) + b1, 0.0)
    h2 = jnp.maximum(
        jnp.dot(h1.astype(bf16), w2.astype(bf16),
                preferred_element_type=jnp.float32) + b2, 0.0)
    logits = jnp.dot(h2.astype(bf16), w3.astype(bf16),
                     preferred_element_type=jnp.float32) + b3
    return max_action * jax.nn.sigmoid(logits)


def actor_reference_f32(s, params, max_action):
    w1, b1, w2, b2, w3, b3 = params
    h1 = jnp.maximum(s @ w1 + b1, 0.0)
    h2 = jnp.maximum(h1 @ w2 + b2, 0.0)
    return max_action * jax.nn.sigmoid(h2 @ w3 + b3)


if __name__ == "__main__":
    state_dim, action_dim, hidden_width, max_action = 8, 4, 32, 2.0

    key = jax.random.PRNGKey(0)
    k_params, k_in1, k_in2 = jax.random.split(key, 3)
    raw_params = init_actor_params(k_params, state_dim, hidden_width, action_dim)
    params = prepare_actor_params(raw_params)   # hoisted weight prep (once)

    for batch in (2, 19):   # 19 exercises batch padding + slice-back path
        s = jax.random.normal(k_in1 if batch == 2 else k_in2,
                              (batch, state_dim), dtype=jnp.float32)

        a = actor_forward(s, params, max_action)
        a = jax.block_until_ready(a)
        assert a.shape == (batch, action_dim)

        # Check vs. a reference using the same bf16-operand matmuls.  Tolerance
        # covers bf16 rounding + the EUP approx-reciprocal in the sigmoid.
        a_bf16_ref = actor_reference_bf16(s, raw_params, max_action)
        assert jnp.allclose(a, a_bf16_ref, atol=1e-2, rtol=1e-2), (
            "mismatch vs bf16 reference")

        # Loose check vs. the pure-f32 PyTorch-equivalent math.
        a_f32_ref = actor_reference_f32(s, raw_params, max_action)
        assert jnp.allclose(a, a_f32_ref, atol=5e-2, rtol=5e-2), (
            "mismatch vs f32 reference")

    print("KERNEL_OK")
</pallas_src>

<mosaic_0001>
module attributes {stable_mosaic.version = 11 : i64} {
  func.func @actor_kernel(%arg0: i32, %arg1: memref<8x8xbf16, #tpu.memory_space<vmem>>, %arg2: memref<8x32xbf16, #tpu.memory_space<vmem>>, %arg3: memref<1x32xf32, #tpu.memory_space<vmem>>, %arg4: memref<32x32xbf16, #tpu.memory_space<vmem>>, %arg5: memref<1x32xf32, #tpu.memory_space<vmem>>, %arg6: memref<32x4xbf16, #tpu.memory_space<vmem>>, %arg7: memref<1x4xf32, #tpu.memory_space<vmem>>, %arg8: memref<1x1xf32, #tpu.memory_space<smem>>, %arg9: memref<8x4xf32, #tpu.memory_space<vmem>>) attributes {dimension_semantics = [#tpu.dimension_semantics<parallel>], iteration_bounds = array<i64: 1>, scalar_prefetch = 0 : i64, scratch_operands = 0 : i64, tpu.core_type = #tpu.core_type<tc>, window_params = [{transform_indices = @transform_0, window_bounds = array<i64: 8, 8>}, {pipeline_mode = #tpu.pipeline_mode<synchronous>, transform_indices = @transform_1, window_bounds = array<i64: 8, 32>}, {pipeline_mode = #tpu.pipeline_mode<synchronous>, transform_indices = @transform_2, window_bounds = array<i64: 1, 32>}, {pipeline_mode = #tpu.pipeline_mode<synchronous>, transform_indices = @transform_3, window_bounds = array<i64: 32, 32>}, {pipeline_mode = #tpu.pipeline_mode<synchronous>, transform_indices = @transform_4, window_bounds = array<i64: 1, 32>}, {pipeline_mode = #tpu.pipeline_mode<synchronous>, transform_indices = @transform_5, window_bounds = array<i64: 32, 4>}, {pipeline_mode = #tpu.pipeline_mode<synchronous>, transform_indices = @transform_6, window_bounds = array<i64: 1, 4>}, {transform_indices = @transform_7, window_bounds = array<i64: 1, 1>}, {transform_indices = @transform_8, window_bounds = array<i64: 8, 4>}]} {
    %c0 = arith.constant 0 : index
    %c0_0 = arith.constant 0 : index
    %0 = vector.load %arg1[%c0, %c0_0] : memref<8x8xbf16, #tpu.memory_space<vmem>>, vector<8x8xbf16>
    %c0_1 = arith.constant 0 : index
    %c0_2 = arith.constant 0 : index
    %1 = vector.load %arg2[%c0_1, %c0_2] : memref<8x32xbf16, #tpu.memory_space<vmem>>, vector<8x32xbf16>
    %cst = arith.constant dense<0.000000e+00> : vector<8x32xf32>
    %2 = tpu.matmul %0, %1, %cst {dimension_numbers = #tpu.dot_dimension_numbers<[1], [0], [0], [1], [0, 0, 1, 1], [], []>} : vector<8x8xbf16>, vector<8x32xbf16>, vector<8x32xf32> -> vector<8x32xf32>
    %c0_3 = arith.constant 0 : index
    %c0_4 = arith.constant 0 : index
    %3 = vector.load %arg3[%c0_3, %c0_4] : memref<1x32xf32, #tpu.memory_space<vmem>>, vector<1x32xf32>
    %4 = vector.broadcast %3 : vector<1x32xf32> to vector<8x32xf32>
    %5 = arith.addf %2, %4 : vector<8x32xf32>
    %cst_5 = arith.constant 0.000000e+00 : f32
    %6 = vector.broadcast %cst_5 : f32 to vector<8x32xf32>
    %7 = arith.maximumf %5, %6 : vector<8x32xf32>
    %8 = arith.truncf %7 : vector<8x32xf32> to vector<8x32xbf16>
    %c0_6 = arith.constant 0 : index
    %c0_7 = arith.constant 0 : index
    %9 = vector.load %arg4[%c0_6, %c0_7] : memref<32x32xbf16, #tpu.memory_space<vmem>>, vector<32x32xbf16>
    %cst_8 = arith.constant dense<0.000000e+00> : vector<8x32xf32>
    %10 = tpu.matmul %8, %9, %cst_8 {dimension_numbers = #tpu.dot_dimension_numbers<[1], [0], [0], [1], [0, 0, 1, 1], [], []>} : vector<8x32xbf16>, vector<32x32xbf16>, vector<8x32xf32> -> vector<8x32xf32>
    %c0_9 = arith.constant 0 : index
    %c0_10 = arith.constant 0 : index
    %11 = vector.load %arg5[%c0_9, %c0_10] : memref<1x32xf32, #tpu.memory_space<vmem>>, vector<1x32xf32>
    %12 = vector.broadcast %11 : vector<1x32xf32> to vector<8x32xf32>
    %13 = arith.addf %10, %12 : vector<8x32xf32>
    %cst_11 = arith.constant 0.000000e+00 : f32
    %14 = vector.broadcast %cst_11 : f32 to vector<8x32xf32>
    %15 = arith.maximumf %13, %14 : vector<8x32xf32>
    %16 = arith.truncf %15 : vector<8x32xf32> to vector<8x32xbf16>
    %c0_12 = arith.constant 0 : index
    %c0_13 = arith.constant 0 : index
    %17 = vector.load %arg6[%c0_12, %c0_13] : memref<32x4xbf16, #tpu.memory_space<vmem>>, vector<32x4xbf16>
    %cst_14 = arith.constant dense<0.000000e+00> : vector<8x4xf32>
    %18 = tpu.matmul %16, %17, %cst_14 {dimension_numbers = #tpu.dot_dimension_numbers<[1], [0], [0], [1], [0, 0, 1, 1], [], []>} : vector<8x32xbf16>, vector<32x4xbf16>, vector<8x4xf32> -> vector<8x4xf32>
    %c0_15 = arith.constant 0 : index
    %c0_16 = arith.constant 0 : index
    %19 = vector.load %arg7[%c0_15, %c0_16] : memref<1x4xf32, #tpu.memory_space<vmem>>, vector<1x4xf32>
    %20 = vector.broadcast %19 : vector<1x4xf32> to vector<8x4xf32>
    %21 = arith.addf %18, %20 : vector<8x4xf32>
    %cst_17 = arith.constant 0.000000e+00 : f32
    %22 = vector.broadcast %cst_17 : f32 to vector<8x4xf32>
    %23 = arith.subf %22, %21 : vector<8x4xf32>
    %24 = math.exp %23 : vector<8x4xf32>
    %cst_18 = arith.constant 1.000000e+00 : f32
    %25 = vector.broadcast %cst_18 : f32 to vector<8x4xf32>
    %26 = arith.addf %25, %24 : vector<8x4xf32>
    %27 = tpu.reciprocal %26 {approx = true} : vector<8x4xf32> -> vector<8x4xf32>
    %c0_19 = arith.constant 0 : index
    %c0_20 = arith.constant 0 : index
    %28 = memref.load %arg8[%c0_19, %c0_20] : memref<1x1xf32, #tpu.memory_space<smem>>
    %29 = vector.broadcast %28 : f32 to vector<8x4xf32>
    %30 = arith.mulf %29, %27 : vector<8x4xf32>
    %c0_21 = arith.constant 0 : index
    %c0_22 = arith.constant 0 : index
    %31 = vector.load %arg9[%c0_21, %c0_22] : memref<8x4xf32, #tpu.memory_space<vmem>>, vector<8x4xf32>
    tpu.vector_store %arg9[%c0_21, %c0_22], %30 {strides = array<i32>} : memref<8x4xf32, #tpu.memory_space<vmem>>, vector<8x4xf32>,
    return
  }
  func.func @transform_0(%arg0: i32) -> (i32, i32) {
    %c0_i32 = arith.constant 0 : i32
    %c0_i32_0 = arith.constant 0 : i32
    return %arg0, %c0_i32 : i32, i32
  }
  func.func @transform_1(%arg0: i32) -> (i32, i32) {
    %c0_i32 = arith.constant 0 : i32
    %c0_i32_0 = arith.constant 0 : i32
    %c0_i32_1 = arith.constant 0 : i32
    return %c0_i32, %c0_i32_0 : i32, i32
  }
  func.func @transform_2(%arg0: i32) -> (i32, i32) {
    %c0_i32 = arith.constant 0 : i32
    %c0_i32_0 = arith.constant 0 : i32
    %c0_i32_1 = arith.constant 0 : i32
    return %c0_i32, %c0_i32_0 : i32, i32
  }
  func.func @transform_3(%arg0: i32) -> (i32, i32) {
    %c0_i32 = arith.constant 0 : i32
    %c0_i32_0 = arith.constant 0 : i32
    %c0_i32_1 = arith.constant 0 : i32
    return %c0_i32, %c0_i32_0 : i32, i32
  }
  func.func @transform_4(%arg0: i32) -> (i32, i32) {
    %c0_i32 = arith.constant 0 : i32
    %c0_i32_0 = arith.constant 0 : i32
    %c0_i32_1 = arith.constant 0 : i32
    return %c0_i32, %c0_i32_0 : i32, i32
  }
  func.func @transform_5(%arg0: i32) -> (i32, i32) {
    %c0_i32 = arith.constant 0 : i32
    %c0_i32_0 = arith.constant 0 : i32
    %c0_i32_1 = arith.constant 0 : i32
    return %c0_i32, %c0_i32_0 : i32, i32
  }
  func.func @transform_6(%arg0: i32) -> (i32, i32) {
    %c0_i32 = arith.constant 0 : i32
    %c0_i32_0 = arith.constant 0 : i32
    %c0_i32_1 = arith.constant 0 : i32
    return %c0_i32, %c0_i32_0 : i32, i32
  }
  func.func @transform_7(%arg0: i32) -> (i32, i32) {
    %c0_i32 = arith.constant 0 : i32
    %c0_i32_0 = arith.constant 0 : i32
    %c0_i32_1 = arith.constant 0 : i32
    return %c0_i32, %c0_i32_0 : i32, i32
  }
  func.func @transform_8(%arg0: i32) -> (i32, i32) {
    %c0_i32 = arith.constant 0 : i32
    %c0_i32_0 = arith.constant 0 : i32
    return %arg0, %c0_i32 : i32, i32
  }
}

</mosaic_0001>

<bundles_post_ra>
// kernel: tpu_custom_call.1
= control target key start
LH: loop header
LB: loop body
LE: loop exit
PB: predicated region body
PF: predicated region fallthrough
CT: control target
= control target key end

     0   :  { %14 = vsyncpa [#allocation4], 0  ;;  %s325_s27 = smov [#allocation3]   ;;  %s406_s0 = inlined_call_operand.vmem [shape: bf16[8,8], index: 0, kind: input, shape index: {}]   ;;  %s407_s1 = inlined_call_operand.vmem [shape: bf16[8,32], index: 1, kind: input, shape index: {}]   ;;  %s408_s2 = inlined_call_operand.vmem [shape: f32[1,32], index: 2, kind: input, shape index: {}]   ;;  %s409_s3 = inlined_call_operand.vmem [shape: bf16[32,32], index: 3, kind: input, shape index: {}]   ;;  %s410_s4 = inlined_call_operand.hbm [shape: f32[1,32], index: 4, kind: input, shape index: {}]   ;;  %s411_s5 = inlined_call_operand.vmem [shape: bf16[32,4], index: 5, kind: input, shape index: {}]   ;;  %s412_s6 = inlined_call_operand.vmem [shape: f32[1,4], index: 6, kind: input, shape index: {}]   ;;  %s413_s7 = inlined_call_operand.<no memory space> [shape: f32[1,1], index: 7, kind: input, shape index: {}]   ;;  %s414_s8 = inlined_call_operand.vmem [shape: f32[8,4], index: 8, kind: output, shape index: {}]  }
   0x1   :  { %s29_s28 = sshll.u32 %s325_s27, 4  ;;  %s30_s28 = int_to_ptr.vmem [resolvable:$true] %s29_s28 }
   0x2   :  { %s311_s29 = scalar_lea.vmem %s30_s28, 16  ;;  %s315_s30 = scalar_lea.vmem %s30_s28, 32 }
   0x3   :  { %p312_p0 = scmp.ne.s32.totalorder %s30_s28, %s311_s29  ;;  %p316_p1 = scmp.lt.s32.totalorder %s30_s28, %s30_s28 }
   0x4   :  { %p317_p2 = scmp.lt.s32.totalorder %s315_s30, %s311_s29 }
   0x6   :  { %p318_p3 = por %p317_p2, %p316_p1 }
   0x8   :  { %p319_p4 = pnand %p318_p3, %p312_p0 }
   0xa   :  { %322 = shalt.err (!%p319_p4)
}
   0xb   :  { %32 = dma.hbm_to_vmem [thread:$0]  %s410_s4, 16, %s30_s28, [#allocation4]  }
   0xc   :  { %323 = dma.done.wait [#allocation4], 16  }
   0xd   :  { %324 = vsyncadd [#allocation4], 4294967280  ;;  %v326_v0 = vmov 0.0   ;;  %vm327_vm0 = vmmov 0   ;;  %vm56_vm1 = vcmask 1043456   ;;  %vm52_vm2 = vcmask 64512  }
   0xe   :  { %270 = vmatprep.subr.bf16.mxu0 %v326_v0  ;;  %272 = vmatprep.mubr.msk.bf16.mxu0 %vm327_vm0, %v326_v0  ;;  %v44_v1 = vld [vmem:[%s407_s1] sm:$0xf]  ;;  %v295_v4 = vld [vmem:[%s409_s3 + $0x8] sm:$0xff]   ;;  %vm125_vm3 = vcmask 261120   ;;  %v243_v34 = vstv %s413_s7  ;;  %vm245_vm4 = vcmask 31744  }
   0xf   :  { %276 = vmatprep.subr.bf16.mxu1 %v326_v0  ;;  %280 = vmatprep.mubr.msk.bf16.mxu1 %vm327_vm0, %v326_v0  ;;  %v43_v2 = vld [vmem:[%s406_s0] sm:$0xf]  ;;  %v58_v3 = vsel %vm56_vm1, %v44_v1, 0  ;;  %v297_v6 = vld [vmem:[%s411_s5 + $0x8] sm:$0xff]  }
  0x10   :  { %271 = vmatpush3.bf16.msra.mxu0 %v58_v3  ;;  %277 = vmatpush3.bf16.msra.mxu1 %v295_v4  ;;  %v296_v5 = vld [vmem:[%s409_s3] sm:$0xff]  }
  0x11   :  { %284 = vmatprep.subr.bf16.mxu0 %v326_v0  ;;  %278 = vmatprep.subr.bf16.mxu1 %v326_v0  ;;  %v252_v7 = vld [vmem:[%s408_s2] ss:$0 sm:$0xff] }
  0x12   :  { %v298_v15 = vld [vmem:[%s411_s5] sm:$0xff]  }
  0x13   :  { %273 = vmatmul.mubr.msk.bf16.vlgmr.msra.gmra.mxu0 %vm52_vm2, %v43_v2  ;;  %v254_v16 = vld [vmem:[#allocation3] ss:$0 sm:$0xff] }
  0x14   :  { %288 = vmatprep.mubr.msk.bf16.mxu0 %vm327_vm0, %v326_v0  ;;  %279 = vmatpush3.bf16.msra.mxu1 %v296_v5  ;;  %v258_v24 = vld [vmem:[%s412_s6] ss:$0 sm:$0xff] }
  0x15   :  { %285 = vmatpush3.bf16.msra.mxu0 %v297_v6 }
  0x16   :  { %286 = vmatprep.subr.bf16.mxu0 %v326_v0 }
  0x19   :  { %287 = vmatpush3.bf16.msra.mxu0 %v298_v15 }
  0xd3   :  { %v94_v8 = vpop.f32.mrf.mxu0 }
  0xd4   :  { %v95_v9 = vadd.f32 %v252_v7, %v94_v8 }
  0xd5   :  { %v274_v10 = vpop.f32.mrf.mxu0 }
  0xd6   :  { %v100_v11 = vmax.f32 %v95_v9, 0.0 }
  0xd7   :  { %v97_v12 = vpop.f32.mrf.mxu0 }
  0xd8   :  { %v101_v13 = vpack.c.bf16 %v100_v11, %v100_v11 }
  0xd9   :  { %v275_v14 = vpop.f32.mrf.mxu0 }
  0xda   :  { %281 = vmatmul.mubr.msk.bf16.vlgmr.msra.gmra.mxu1 %vm125_vm3, %v101_v13 }
 0x19a   :  { %v163_v17 = vpop.f32.mrf.mxu1 }
 0x19b   :  { %v164_v18 = vadd.f32 %v254_v16, %v163_v17 }
 0x19c   :  { %v282_v19 = vpop.f32.mrf.mxu1 }
 0x19d   :  { %v169_v20 = vmax.f32 %v164_v18, 0.0 }
 0x19e   :  { %v166_v21 = vpop.f32.mrf.mxu1 }
 0x19f   :  { %v170_v22 = vpack.c.bf16 %v169_v20, %v169_v20 }
 0x1a0   :  { %v283_v23 = vpop.f32.mrf.mxu1 }
 0x1a1   :  { %289 = vmatmul.mubr.msk.bf16.vlgmr.msra.gmra.mxu0 %vm125_vm3, %v170_v22 }
 0x261   :  { %v231_v25 = vpop.f32.mrf.mxu0 }
 0x262   :  { %v232_v26 = vadd.f32 %v258_v24, %v231_v25 }
 0x263   :  { %v290_v27 = vpop.f32.mrf.mxu0 }
 0x264   :  { %v237_v28 = vsub.f32 0.0, %v232_v26 }
 0x265   :  { %v234_v29 = vpop.f32.mrf.mxu0 }
 0x266   :  { %v238_v30 = vmul.f32 1.442695, %v237_v28 }
 0x267   :  { %v291_v31 = vpop.f32.mrf.mxu0 }
 0x268   :  { %299 = vpow2.f32 %v238_v30 }
 0x275   :  { %v300_v32 = vpop.eup %299 }
 0x276   :  { %v240_v33 = vadd.f32 1.0, %v300_v32 }
 0x278   :  { %301 = vrcp.f32 %v240_v33 }
 0x285   :  { %v302_v35 = vpop.eup %301 }
 0x286   :  { %v244_v36 = vmul.f32 %v302_v35, %v243_v34 }
 0x288   :  { %246 = vst.msk [vmem:[%s414_s8] sm:$0xff] %vm245_vm4, %v244_v36 }
 0x289   :  { %251 = vsyncpa [#allocation4], 1 }

</bundles_post_ra>
